<compile_context>
chip_gen: v5e
topology: v5e:2x2
jax: 0.10.0
libtpu: 0.0.40
codegen_flags: <defaults>
</compile_context>

<pallas_src>
import functools

import jax
import jax.numpy as jnp
from jax.experimental import pallas as pl
from jax.experimental.pallas import tpu as pltpu


def _round_up(v, m):
    return (v + m - 1) // m * m


def gru_unit_kernel(support_ref, x_ref, mask_ref,
                    wa_ref, wx_ref, wh1_ref, bias_ref,
                    out_ref):
    Bt, Np, Dp = x_ref.shape

    support = support_ref[...]                    # (Bt, Np, Np) bf16
    x = x_ref[...]                                # (Bt, Np, Dp) f32 (kept f32 for the gate math)
    x_bf = x.astype(jnp.bfloat16)

    # a = support @ x  (message passing), batched MXU matmul with f32 accumulation.
    a = jnp.einsum('bij,bjd->bid', support, x_bf,
                   preferred_element_type=jnp.float32)       # (Bt, Np, Dp) f32

    # Flatten batch*nodes for tall, lane-dense gate matmuls.
    a2 = a.reshape(Bt * Np, Dp)
    x2 = x.reshape(Bt * Np, Dp)
    x2_bf = x_bf.reshape(Bt * Np, Dp)
    m2 = mask_ref[...].reshape(Bt * Np, 1)

    # Fused gate matmuls: a @ [Wz0 | Wr0 | Wh0] and x @ [Wz1 | Wr1].
    # bias_ref already holds [z0b+z1b | r0b+r1b | h0b+h1b].
    ga = jnp.dot(a2.astype(jnp.bfloat16), wa_ref[...],
                 preferred_element_type=jnp.float32) + bias_ref[...]   # (Bt*Np, 3*Dp)
    gx = jnp.dot(x2_bf, wx_ref[...],
                 preferred_element_type=jnp.float32)                   # (Bt*Np, 2*Dp)

    # Dp is a multiple of 128, so these slices are tile-aligned (no relayout copies).
    z = jax.nn.sigmoid(ga[:, :Dp] + gx[:, :Dp])
    r = jax.nn.sigmoid(ga[:, Dp:2 * Dp] + gx[:, Dp:2 * Dp])

    h1 = jnp.dot((r * x2).astype(jnp.bfloat16), wh1_ref[...],
                 preferred_element_type=jnp.float32)
    h = jnp.tanh(m2 * (ga[:, 2 * Dp:] + h1))      # act = tanh

    out2 = h * z + x2 * (1.0 - z)
    out_ref[...] = out2.reshape(Bt, Np, Dp).astype(out_ref.dtype)


def gru_unit_pallas(support, x, mask, weights, biases):
    """support [B,N,N], x [B,N,D], mask [B,N,1]; weights: 6 x [D,D]; biases: 6 x [1,D] or [D].

    Order of weights / biases: (z0, z1, r0, r1, h0, h1).
    Dropout is omitted (dropout_p = 1.0 -> identity / eval mode).
    """
    B, N, D = x.shape
    f32 = jnp.float32
    bf16 = jnp.bfloat16

    Np = _round_up(N, 8)       # sublane alignment
    Dp = _round_up(D, 128)     # lane-dense output / tile-aligned gate slices

    # Batch elements per grid step: amortize per-step overhead, bounded by a VMEM budget.
    per_elem_bytes = Np * Np * 2 + Np * Dp * 4 * 10   # support(bf16) + f32 activations/temps
    budget_bytes = 4 * 1024 * 1024
    Bt = int(max(1, min(B, budget_bytes // max(per_elem_bytes, 1), 8)))
    Bp = _round_up(B, Bt)
    grid = (Bp // Bt,)

    # ---- pad + cast activations -------------------------------------------------
    support_p = jnp.pad(support.astype(bf16), ((0, Bp - B), (0, Np - N), (0, Np - N)))
    x_p = jnp.pad(x.astype(f32), ((0, Bp - B), (0, Np - N), (0, Dp - D)))
    mask_p = jnp.pad(mask.astype(f32), ((0, Bp - B), (0, Np - N), (0, 0)))

    # ---- fuse + pad + cast parameters -------------------------------------------
    z0w, z1w, r0w, r1w, h0w, h1w = weights
    z0b, z1b, r0b, r1b, h0b, h1b = [jnp.asarray(b, f32).reshape(1, D) for b in biases]

    def padw(w):
        return jnp.pad(jnp.asarray(w, f32), ((0, Dp - D), (0, Dp - D)))

    def padb(b):
        return jnp.pad(b, ((0, 0), (0, Dp - D)))

    wa = jnp.concatenate([padw(z0w), padw(r0w), padw(h0w)], axis=1).astype(bf16)   # [Dp, 3Dp]
    wx = jnp.concatenate([padw(z1w), padw(r1w)], axis=1).astype(bf16)              # [Dp, 2Dp]
    wh1 = padw(h1w).astype(bf16)                                                   # [Dp, Dp]
    bias = jnp.concatenate([padb(z0b + z1b), padb(r0b + r1b), padb(h0b + h1b)],
                           axis=1)                                                 # [1, 3Dp] f32

    # ---- specs -------------------------------------------------------------------
    batch_spec = lambda shape: pl.BlockSpec(shape, lambda b: (b, 0, 0))
    const_spec = lambda shape: pl.BlockSpec(shape, lambda b: (0, 0))   # grid-invariant

    in_specs = [
        batch_spec((Bt, Np, Np)),        # support
        batch_spec((Bt, Np, Dp)),        # x
        batch_spec((Bt, Np, 1)),         # mask
        const_spec((Dp, 3 * Dp)),        # fused a-path weights
        const_spec((Dp, 2 * Dp)),        # fused x-path weights
        const_spec((Dp, Dp)),            # h1 weight
        const_spec((1, 3 * Dp)),         # fused biases
    ]

    flops = 2 * Bp * Np * (Np * Dp + 6 * Dp * Dp)
    bytes_accessed = (support_p.size * 2 + x_p.size * 4 + mask_p.size * 4
                      + wa.size * 2 + wx.size * 2 + wh1.size * 2 + bias.size * 4
                      + Bp * Np * Dp * 4)
    cost = pl.CostEstimate(flops=int(flops),
                           transcendentals=int(3 * Bp * Np * Dp),
                           bytes_accessed=int(bytes_accessed))

    out_p = pl.pallas_call(
        gru_unit_kernel,
        out_shape=jax.ShapeDtypeStruct((Bp, Np, Dp), x.dtype),
        grid_spec=pltpu.PrefetchScalarGridSpec(
            num_scalar_prefetch=0,
            grid=grid,
            in_specs=in_specs,
            out_specs=pl.BlockSpec((Bt, Np, Dp), lambda b: (b, 0, 0)),
        ),
        compiler_params=pltpu.CompilerParams(
            dimension_semantics=("parallel",),
            vmem_limit_bytes=32 * 1024 * 1024,
        ),
        cost_estimate=cost,
    )(support_p, x_p, mask_p, wa, wx, wh1, bias)

    return out_p[:B, :N, :D]


def glorot(key, shape):
    init_range = jnp.sqrt(6.0 / (shape[0] + shape[1]))
    return jax.random.uniform(key, shape, jnp.float32, -init_range, init_range)


def gru_unit_reference(support, x, mask, weights, biases, matmul_dtype=jnp.float32):
    """Pure-JAX reference.  matmul_dtype=bfloat16 mirrors the kernel's MXU numerics
    (bf16 operands, f32 accumulation)."""
    z0w, z1w, r0w, r1w, h0w, h1w = weights
    z0b, z1b, r0b, r1b, h0b, h1b = [jnp.asarray(b).reshape(1, -1) for b in biases]
    md = matmul_dtype
    mm = lambda p, q: jnp.matmul(p.astype(md), q.astype(md),
                                 preferred_element_type=jnp.float32)
    a = mm(support, x)
    z = jax.nn.sigmoid(mm(a, z0w) + z0b + mm(x, z1w) + z1b)
    r = jax.nn.sigmoid(mm(a, r0w) + r0b + mm(x, r1w) + r1b)
    h = jnp.tanh(mask * (mm(a, h0w) + h0b + mm(r * x, h1w) + h1b))
    return h * z + x * (1.0 - z)


if __name__ == "__main__":
    B, N, D = 2, 16, 32   # batch, num nodes, output_dim (hidden)

    key = jax.random.PRNGKey(0)
    keys = jax.random.split(key, 10)

    support = jax.random.uniform(keys[0], (B, N, N), jnp.float32)
    x = jax.random.normal(keys[1], (B, N, D), jnp.float32)
    mask = (jax.random.uniform(keys[2], (B, N, 1)) > 0.2).astype(jnp.float32)

    # deterministic glorot-initialized parameters (z0, z1, r0, r1, h0, h1)
    weights = [glorot(keys[3 + i], (D, D)) for i in range(6)]
    biases = [jnp.zeros((1, D), jnp.float32) for _ in range(6)]

    # TODO(synk): nn.Dropout(1 - dropout_p) omitted (dropout_p=1.0 -> identity / eval mode).
    out = gru_unit_pallas(support, x, mask, weights, biases)
    out = jax.block_until_ready(out)

    # Reference matched to the kernel's bf16-operand / f32-accumulate MXU numerics.
    ref = gru_unit_reference(support, x, mask, weights, biases, matmul_dtype=jnp.bfloat16)
    assert out.shape == (B, N, D)
    assert jnp.allclose(out, ref, atol=1e-4, rtol=1e-4), "mismatch vs reference"

    print("KERNEL_OK")
</pallas_src>

<mosaic_0001>
module attributes {stable_mosaic.version = 11 : i64} {
  func.func @gru_unit_kernel(%arg0: i32, %arg1: memref<2x16x16xbf16, #tpu.memory_space<vmem>>, %arg2: memref<2x16x128xf32, #tpu.memory_space<vmem>>, %arg3: memref<2x16x1xf32, #tpu.memory_space<vmem>>, %arg4: memref<128x384xbf16, #tpu.memory_space<vmem>>, %arg5: memref<128x256xbf16, #tpu.memory_space<vmem>>, %arg6: memref<128x128xbf16, #tpu.memory_space<vmem>>, %arg7: memref<1x384xf32, #tpu.memory_space<vmem>>, %arg8: memref<2x16x128xf32, #tpu.memory_space<vmem>>) attributes {dimension_semantics = [#tpu.dimension_semantics<parallel>], iteration_bounds = array<i64: 1>, scalar_prefetch = 0 : i64, scratch_operands = 0 : i64, tpu.core_type = #tpu.core_type<tc>, window_params = [{transform_indices = @transform_0, window_bounds = array<i64: 2, 16, 16>}, {transform_indices = @transform_1, window_bounds = array<i64: 2, 16, 128>}, {transform_indices = @transform_2, window_bounds = array<i64: 2, 16, 1>}, {pipeline_mode = #tpu.pipeline_mode<synchronous>, transform_indices = @transform_3, window_bounds = array<i64: 128, 384>}, {pipeline_mode = #tpu.pipeline_mode<synchronous>, transform_indices = @transform_4, window_bounds = array<i64: 128, 256>}, {pipeline_mode = #tpu.pipeline_mode<synchronous>, transform_indices = @transform_5, window_bounds = array<i64: 128, 128>}, {pipeline_mode = #tpu.pipeline_mode<synchronous>, transform_indices = @transform_6, window_bounds = array<i64: 1, 384>}, {transform_indices = @transform_7, window_bounds = array<i64: 2, 16, 128>}]} {
    %c0 = arith.constant 0 : index
    %c0_0 = arith.constant 0 : index
    %c0_1 = arith.constant 0 : index
    %0 = vector.load %arg1[%c0, %c0_0, %c0_1] : memref<2x16x16xbf16, #tpu.memory_space<vmem>>, vector<2x16x16xbf16>
    %c0_2 = arith.constant 0 : index
    %c0_3 = arith.constant 0 : index
    %c0_4 = arith.constant 0 : index
    %1 = vector.load %arg2[%c0_2, %c0_3, %c0_4] : memref<2x16x128xf32, #tpu.memory_space<vmem>>, vector<2x16x128xf32>
    %2 = arith.truncf %1 : vector<2x16x128xf32> to vector<2x16x128xbf16>
    "tpu.trace_start"() <{level = 10 : i32, message = "bij,bjd->bid"}> : () -> ()
    %cst = arith.constant dense<0.000000e+00> : vector<2x16x128xf32>
    %3 = tpu.matmul %0, %2, %cst {dimension_numbers = #tpu.dot_dimension_numbers<[2], [1], [1], [2], [0, 0, 0, 1, 1, 2], [0], [0]>} : vector<2x16x16xbf16>, vector<2x16x128xbf16>, vector<2x16x128xf32> -> vector<2x16x128xf32>
    "tpu.trace_stop"() : () -> ()
    %4 = vector.shape_cast %3 : vector<2x16x128xf32> to vector<32x128xf32>
    %5 = vector.shape_cast %1 : vector<2x16x128xf32> to vector<32x128xf32>
    %6 = vector.shape_cast %2 : vector<2x16x128xbf16> to vector<32x128xbf16>
    %c0_5 = arith.constant 0 : index
    %c0_6 = arith.constant 0 : index
    %c0_7 = arith.constant 0 : index
    %7 = vector.load %arg3[%c0_5, %c0_6, %c0_7] : memref<2x16x1xf32, #tpu.memory_space<vmem>>, vector<2x16x1xf32>
    %8 = vector.shape_cast %7 : vector<2x16x1xf32> to vector<32x1xf32>
    %9 = arith.truncf %4 : vector<32x128xf32> to vector<32x128xbf16>
    %c0_8 = arith.constant 0 : index
    %c0_9 = arith.constant 0 : index
    %10 = vector.load %arg4[%c0_8, %c0_9] : memref<128x384xbf16, #tpu.memory_space<vmem>>, vector<128x384xbf16>
    %cst_10 = arith.constant dense<0.000000e+00> : vector<32x384xf32>
    %11 = tpu.matmul %9, %10, %cst_10 {dimension_numbers = #tpu.dot_dimension_numbers<[1], [0], [0], [1], [0, 0, 1, 1], [], []>} : vector<32x128xbf16>, vector<128x384xbf16>, vector<32x384xf32> -> vector<32x384xf32>
    %c0_11 = arith.constant 0 : index
    %c0_12 = arith.constant 0 : index
    %12 = vector.load %arg7[%c0_11, %c0_12] : memref<1x384xf32, #tpu.memory_space<vmem>>, vector<1x384xf32>
    %13 = vector.broadcast %12 : vector<1x384xf32> to vector<32x384xf32>
    %14 = arith.addf %11, %13 : vector<32x384xf32>
    %c0_13 = arith.constant 0 : index
    %c0_14 = arith.constant 0 : index
    %15 = vector.load %arg5[%c0_13, %c0_14] : memref<128x256xbf16, #tpu.memory_space<vmem>>, vector<128x256xbf16>
    %cst_15 = arith.constant dense<0.000000e+00> : vector<32x256xf32>
    %16 = tpu.matmul %6, %15, %cst_15 {dimension_numbers = #tpu.dot_dimension_numbers<[1], [0], [0], [1], [0, 0, 1, 1], [], []>} : vector<32x128xbf16>, vector<128x256xbf16>, vector<32x256xf32> -> vector<32x256xf32>
    %17 = vector.extract_strided_slice %14 {offsets = [0, 0], sizes = [32, 128], strides = [1, 1]} : vector<32x384xf32> to vector<32x128xf32>
    %18 = vector.extract_strided_slice %16 {offsets = [0, 0], sizes = [32, 128], strides = [1, 1]} : vector<32x256xf32> to vector<32x128xf32>
    %19 = arith.addf %17, %18 : vector<32x128xf32>
    %20 = arith.negf %19 : vector<32x128xf32>
    %21 = math.exp %20 : vector<32x128xf32>
    %cst_16 = arith.constant 1.000000e+00 : f32
    %22 = vector.broadcast %cst_16 : f32 to vector<32x128xf32>
    %23 = arith.addf %22, %21 : vector<32x128xf32>
    %24 = arith.divf %22, %23 : vector<32x128xf32>
    %25 = vector.extract_strided_slice %14 {offsets = [0, 128], sizes = [32, 128], strides = [1, 1]} : vector<32x384xf32> to vector<32x128xf32>
    %26 = vector.extract_strided_slice %16 {offsets = [0, 128], sizes = [32, 128], strides = [1, 1]} : vector<32x256xf32> to vector<32x128xf32>
    %27 = arith.addf %25, %26 : vector<32x128xf32>
    %28 = arith.negf %27 : vector<32x128xf32>
    %29 = math.exp %28 : vector<32x128xf32>
    %cst_17 = arith.constant 1.000000e+00 : f32
    %30 = vector.broadcast %cst_17 : f32 to vector<32x128xf32>
    %31 = arith.addf %30, %29 : vector<32x128xf32>
    %32 = arith.divf %30, %31 : vector<32x128xf32>
    %33 = arith.mulf %32, %5 : vector<32x128xf32>
    %34 = arith.truncf %33 : vector<32x128xf32> to vector<32x128xbf16>
    %c0_18 = arith.constant 0 : index
    %c0_19 = arith.constant 0 : index
    %35 = vector.load %arg6[%c0_18, %c0_19] : memref<128x128xbf16, #tpu.memory_space<vmem>>, vector<128x128xbf16>
    %cst_20 = arith.constant dense<0.000000e+00> : vector<32x128xf32>
    %36 = tpu.matmul %34, %35, %cst_20 {dimension_numbers = #tpu.dot_dimension_numbers<[1], [0], [0], [1], [0, 0, 1, 1], [], []>} : vector<32x128xbf16>, vector<128x128xbf16>, vector<32x128xf32> -> vector<32x128xf32>
    %37 = vector.extract_strided_slice %14 {offsets = [0, 256], sizes = [32, 128], strides = [1, 1]} : vector<32x384xf32> to vector<32x128xf32>
    %38 = arith.addf %37, %36 : vector<32x128xf32>
    %39 = vector.broadcast %8 : vector<32x1xf32> to vector<32x128xf32>
    %40 = arith.mulf %39, %38 : vector<32x128xf32>
    %41 = math.tanh %40 : vector<32x128xf32>
    %42 = arith.mulf %41, %24 : vector<32x128xf32>
    %cst_21 = arith.constant 1.000000e+00 : f32
    %43 = vector.broadcast %cst_21 : f32 to vector<32x128xf32>
    %44 = arith.subf %43, %24 : vector<32x128xf32>
    %45 = arith.mulf %5, %44 : vector<32x128xf32>
    %46 = arith.addf %42, %45 : vector<32x128xf32>
    %47 = vector.shape_cast %46 : vector<32x128xf32> to vector<2x16x128xf32>
    %c0_22 = arith.constant 0 : index
    %c0_23 = arith.constant 0 : index
    %c0_24 = arith.constant 0 : index
    %48 = vector.load %arg8[%c0_22, %c0_23, %c0_24] : memref<2x16x128xf32, #tpu.memory_space<vmem>>, vector<2x16x128xf32>
    tpu.vector_store %arg8[%c0_22, %c0_23, %c0_24], %47 {strides = array<i32>} : memref<2x16x128xf32, #tpu.memory_space<vmem>>, vector<2x16x128xf32>,
    return
  }
  func.func @transform_0(%arg0: i32) -> (i32, i32, i32) {
    %c0_i32 = arith.constant 0 : i32
    %c0_i32_0 = arith.constant 0 : i32
    %c0_i32_1 = arith.constant 0 : i32
    return %arg0, %c0_i32, %c0_i32_0 : i32, i32, i32
  }
  func.func @transform_1(%arg0: i32) -> (i32, i32, i32) {
    %c0_i32 = arith.constant 0 : i32
    %c0_i32_0 = arith.constant 0 : i32
    %c0_i32_1 = arith.constant 0 : i32
    return %arg0, %c0_i32, %c0_i32_0 : i32, i32, i32
  }
  func.func @transform_2(%arg0: i32) -> (i32, i32, i32) {
    %c0_i32 = arith.constant 0 : i32
    %c0_i32_0 = arith.constant 0 : i32
    %c0_i32_1 = arith.constant 0 : i32
    return %arg0, %c0_i32, %c0_i32_0 : i32, i32, i32
  }
  func.func @transform_3(%arg0: i32) -> (i32, i32) {
    %c0_i32 = arith.constant 0 : i32
    %c0_i32_0 = arith.constant 0 : i32
    %c0_i32_1 = arith.constant 0 : i32
    return %c0_i32, %c0_i32_0 : i32, i32
  }
  func.func @transform_4(%arg0: i32) -> (i32, i32) {
    %c0_i32 = arith.constant 0 : i32
    %c0_i32_0 = arith.constant 0 : i32
    %c0_i32_1 = arith.constant 0 : i32
    return %c0_i32, %c0_i32_0 : i32, i32
  }
  func.func @transform_5(%arg0: i32) -> (i32, i32) {
    %c0_i32 = arith.constant 0 : i32
    %c0_i32_0 = arith.constant 0 : i32
    %c0_i32_1 = arith.constant 0 : i32
    return %c0_i32, %c0_i32_0 : i32, i32
  }
  func.func @transform_6(%arg0: i32) -> (i32, i32) {
    %c0_i32 = arith.constant 0 : i32
    %c0_i32_0 = arith.constant 0 : i32
    %c0_i32_1 = arith.constant 0 : i32
    return %c0_i32, %c0_i32_0 : i32, i32
  }
  func.func @transform_7(%arg0: i32) -> (i32, i32, i32) {
    %c0_i32 = arith.constant 0 : i32
    %c0_i32_0 = arith.constant 0 : i32
    %c0_i32_1 = arith.constant 0 : i32
    return %arg0, %c0_i32, %c0_i32_0 : i32, i32, i32
  }
}

</mosaic_0001>

<bundles_post_ra>
// kernel: tpu_custom_call.1
= control target key start
LH: loop header
LB: loop body
LE: loop exit
PB: predicated region body
PF: predicated region fallthrough
CT: control target
= control target key end

     0   :  { %12 = vsyncpa [#allocation3], 0  ;;  %s1542_s0 = inlined_call_operand.hbm [shape: bf16[2,16,16], index: 0, kind: input, shape index: {}]   ;;  %s1543_s1 = inlined_call_operand.vmem [shape: f32[2,16,128], index: 1, kind: input, shape index: {}]   ;;  %s1544_s2 = inlined_call_operand.vmem [shape: f32[2,16,1], index: 2, kind: input, shape index: {}]   ;;  %s1545_s3 = inlined_call_operand.hbm [shape: bf16[128,384], index: 3, kind: input, shape index: {}]   ;;  %s1546_s4 = inlined_call_operand.hbm [shape: bf16[128,256], index: 4, kind: input, shape index: {}]   ;;  %s1547_s5 = inlined_call_operand.hbm [shape: bf16[128,128], index: 5, kind: input, shape index: {}]   ;;  %s1548_s6 = inlined_call_operand.vmem [shape: f32[1,384], index: 6, kind: input, shape index: {}]   ;;  %s1549_s7 = inlined_call_operand.hbm [shape: f32[2,16,128], index: 7, kind: output, shape index: {}]  }
   0x1   :  { %13 = vsyncpa [#allocation6], 0 }
   0x2   :  { %14 = vsyncpa [#allocation9], 0  ;;  %s37_s26 = sshll.u32 %s1545_s3, 4  ;;  %s38_s26 = int_to_ptr.hbm [resolvable:$true] %s37_s26 }
   0x3   :  { %15 = vsyncpa [#allocation4], 0  ;;  %s1305_s27 = smov [#allocation5]   ;;  %s20_s8 = sshll.u32 %s1542_s0, 4  ;;  %s21_s8 = int_to_ptr.hbm [resolvable:$true] %s20_s8 }
   0x4   :  { %s39_s28 = sshll.u32 %s1305_s27, 4  ;;  %s1306_s9 = smov 192   ;;  %s40_s28 = int_to_ptr.vmem [resolvable:$true] %s39_s28 }
   0x5   :  { %s1307_s10 = smov 12   ;;  %s1308_s11 = smov [#allocation2]  }
   0x6   :  { %45 = dma.hbm_to_vmem [thread:$0]  %s38_s26, 3072, %s40_s28, [#allocation6], %s1306_s9, %s1306_s9, %s1307_s10  }
   0x7   :  { %s22_s12 = sshll.u32 %s1308_s11, 4  ;;  %s1309_s13 = smov 64   ;;  %s23_s12 = int_to_ptr.vmem [resolvable:$true] %s22_s12 }
   0x8   :  { %s1310_s14 = smov 4   ;;  %s50_s16 = sshll.u32 %s1546_s4, 4  ;;  %s51_s16 = int_to_ptr.hbm [resolvable:$true] %s50_s16 }
   0x9   :  { %28 = dma.hbm_to_vmem [thread:$0]  %s21_s8, 256, %s23_s12, [#allocation3], %s1309_s13, %s1309_s13, %s1310_s14  }
   0xa   :  { %s1311_s17 = smov [#allocation7]   ;;  %s63_s20 = sshll.u32 %s1547_s5, 4  ;;  %s64_s20 = int_to_ptr.hbm [resolvable:$true] %s63_s20 }
   0xb   :  { %s52_s18 = sshll.u32 %s1311_s17, 4  ;;  %s1312_s21 = smov 128   ;;  %s53_s18 = int_to_ptr.vmem [resolvable:$true] %s52_s18 }
   0xc   :  { %s1313_s22 = smov 8   ;;  %s1314_s23 = smov [#allocation8]  }
   0xd   :  { %58 = dma.hbm_to_vmem [thread:$0]  %s51_s16, 2048, %s53_s18, [#allocation6], %s1312_s21, %s1312_s21, %s1313_s22  }
   0xe   :  { %s65_s24 = sshll.u32 %s1314_s23, 4  ;;  %s66_s24 = int_to_ptr.vmem [resolvable:$true] %s65_s24 }
   0xf   :  { %71 = dma.hbm_to_vmem [thread:$0]  %s64_s20, 1024, %s66_s24, [#allocation9], %s1309_s13, %s1309_s13, %s1310_s14  }
  0x10   :  { %1297 = dma.done.wait [#allocation3], 256  }
  0x11   :  { %1298 = vsyncadd [#allocation3], 4294967040 }
  0x12   :  { %1299 = dma.done.wait [#allocation6], 5120  }
  0x13   :  { %1300 = vsyncadd [#allocation6], 4294962176 }
  0x14   :  { %1301 = dma.done.wait [#allocation9], 1024  }
  0x15   :  { %1302 = vsyncadd [#allocation9], 4294966272  ;;  %v1375_v0 = vld [vmem:[%s1543_s1] sm:$0xff]  ;;  %v1380_v1 = vld [vmem:[%s1543_s1 + $0x8] sm:$0xff]  ;;  %vm114_vm0 = vcmask 130048   ;;  %s832_s18 = sshll.u32 %s1549_s7, 4  ;;  %s833_s18 = int_to_ptr.hbm [resolvable:$true] %s832_s18 }
  0x16   :  { %v99_v2 = vpack.c.bf16 %v1375_v0, %v1375_v0  ;;  %v100_v3 = vpack.c.bf16 %v1380_v1, %v1380_v1  ;;  %v1389_v4 = vld [vmem:[%s1543_s1 + $0x10] sm:$0xff]  ;;  %v1394_v5 = vld [vmem:[%s1543_s1 + $0x18] sm:$0xff]  ;;  %v1081_v9 = vld [vmem:[#allocation5 + $0xb0] sm:$0xf0] }
  0x17   :  { %v101_v6 = vpack.c.bf16 %v1389_v4, %v1389_v4  ;;  %v102_v7 = vpack.c.bf16 %v1394_v5, %v1394_v5  ;;  %v943_v8 = vld [vmem:[#allocation5 + $0xa8] sm:$0xf]  ;;  %v1080_v10 = vld [vmem:[#allocation5 + $0xac] sm:$0xf]  ;;  %v945_v14 = vld [vmem:[#allocation5 + $0xb4] sm:$0xf0] }
  0x18   :  { %v110_v11 = vunpack.c.l.b16 %v99_v2  ;;  %v111_v12 = vunpack.c.l.b16 %v100_v3  ;;  %v944_v13 = vor.u32 %v1081_v9, %v943_v8  ;;  %v951_v15 = vld [vmem:[#allocation5 + $0xb0] sm:$0xf]  ;;  %v1082_v16 = vld [vmem:[#allocation5 + $0xb8] sm:$0xf0]  ;;  %v948_v19 = vor.u32 %v1080_v10, %v945_v14  ;;  %v1077_v23 = vld [vmem:[#allocation5 + $0x94] sm:$0xf] }
  0x19   :  { %v139_v17 = vunpack.c.l.b16 %v101_v6  ;;  %v140_v18 = vunpack.c.l.b16 %v102_v7  ;;  %v952_v20 = vor.u32 %v1082_v16, %v951_v15  ;;  %v931_v21 = vld [vmem:[#allocation5 + $0x90] sm:$0xf]  ;;  %v1078_v22 = vld [vmem:[#allocation5 + $0x98] sm:$0xf0]  ;;  %v933_v26 = vld [vmem:[#allocation5 + $0x9c] sm:$0xf0] }
  0x1a   :  { %v1400_v24 = vpack.c.b16 %v111_v12, %v110_v11  ;;  %334 = vmatpush.bf16.msra.mxu2 %v944_v13  ;;  %v932_v25 = vor.u32 %v1078_v22, %v931_v21  ;;  %v939_v27 = vld [vmem:[#allocation5 + $0x98] sm:$0xf]  ;;  %v1079_v28 = vld [vmem:[#allocation5 + $0xa0] sm:$0xf0]  ;;  %v1057_v29 = vld [vmem:[#allocation2] sm:$0xff]  ;;  %353 = vmatpush.bf16.msra.mxu3 %v948_v19  ;;  %v936_v31 = vor.u32 %v1077_v23, %v933_v26 }
  0x1b   :  { %v1402_v30 = vpack.c.b16 %v140_v18, %v139_v17  ;;  %v919_v32 = vld [vmem:[#allocation5 + $0x78] sm:$0xf]  ;;  %v1075_v33 = vld [vmem:[#allocation5 + $0x80] sm:$0xf0]  ;;  %v1074_v35 = vld [vmem:[#allocation5 + $0x7c] sm:$0xf]  ;;  %v940_v37 = vor.u32 %v1079_v28, %v939_v27 }
  0x1c   :  { %125 = vmatpush.bf16.msra.mxu0 %v1400_v24  ;;  %v1058_v34 = vld [vmem:[#allocation2 + $0x8] sm:$0xff]  ;;  %v921_v36 = vld [vmem:[#allocation5 + $0x84] sm:$0xf0]  ;;  %v1011_v38 = vld [vmem:[#allocation7 + $0x70] sm:$0xf]  ;;  %v920_v40 = vor.u32 %v1075_v33, %v919_v32 }
  0x1d   :  { %153 = vmatpush.bf16.msra.mxu1 %v1402_v30  ;;  %v1098_v39 = vld [vmem:[#allocation7 + $0x74] sm:$0xf0]  ;;  %v927_v41 = vld [vmem:[#allocation5 + $0x80] sm:$0xf]  ;;  %v1076_v42 = vld [vmem:[#allocation5 + $0x88] sm:$0xf0]  ;;  %v924_v44 = vor.u32 %v1074_v35, %v921_v36 }
  0x1e   :  { %335 = vmatpush.bf16.msra.mxu2 %v932_v25  ;;  %v1012_v43 = vor.u32 %v1098_v39, %v1011_v38  ;;  %354 = vmatpush.bf16.msra.mxu3 %v936_v31  ;;  %v907_v45 = vld [vmem:[#allocation5 + $0x60] sm:$0xf]  ;;  %v1072_v46 = vld [vmem:[#allocation5 + $0x68] sm:$0xf0]  ;;  %v1071_v48 = vld [vmem:[#allocation5 + $0x64] sm:$0xf]  ;;  %v928_v51 = vor.u32 %v1076_v42, %v927_v41 }
  0x1f   :  { %851 = vmatmul.msk.bf16.vlgmr.msra.gmra.mxu0 %vm114_vm0, %v1057_v29  ;;  %v1003_v47 = vld [vmem:[#allocation7 + $0x60] sm:$0xf]  ;;  %v909_v49 = vld [vmem:[#allocation5 + $0x6c] sm:$0xf0]  ;;  %v1096_v50 = vld [vmem:[#allocation7 + $0x64] sm:$0xf0]  ;;  %v908_v54 = vor.u32 %v1072_v46, %v907_v45 }
  0x20   :  { %372 = vmatpush.bf16.msrb.mxu0 %v952_v20  ;;  %856 = vmatmul.msk.bf16.vlgmr.msra.gmra.mxu1 %vm114_vm0, %v1058_v34  ;;  %v915_v52 = vld [vmem:[#allocation5 + $0x68] sm:$0xf]  ;;  %v1004_v53 = vor.u32 %v1096_v50, %v1003_v47  ;;  %v1073_v55 = vld [vmem:[#allocation5 + $0x70] sm:$0xf0]  ;;  %v995_v56 = vld [vmem:[#allocation7 + $0x50] sm:$0xf]  ;;  %v912_v58 = vor.u32 %v1071_v48, %v909_v49 }
  0x21   :  { %487 = vmatpush.bf16.msrb.mxu1 %v1012_v43  ;;  %v1094_v57 = vld [vmem:[#allocation7 + $0x54] sm:$0xf0]  ;;  %v895_v59 = vld [vmem:[#allocation5 + $0x48] sm:$0xf]  ;;  %v1069_v60 = vld [vmem:[#allocation5 + $0x50] sm:$0xf0]  ;;  %v916_v63 = vor.u32 %v1073_v55, %v915_v52 }
  0x22   :  { %336 = vmatpush.bf16.msra.mxu2 %v920_v40  ;;  %355 = vmatpush.bf16.msra.mxu3 %v924_v44  ;;  %v1068_v61 = vld [vmem:[#allocation5 + $0x4c] sm:$0xf]  ;;  %v897_v62 = vld [vmem:[#allocation5 + $0x54] sm:$0xf0]  ;;  %v996_v2 = vor.u32 %v1094_v57, %v995_v56  ;;  %v896_v3 = vor.u32 %v1069_v60, %v895_v59  ;;  %v903_v6 = vld [vmem:[#allocation5 + $0x50] sm:$0xf] }
  0x23   :  { %v1070_v7 = vld [vmem:[#allocation5 + $0x58] sm:$0xf0]  ;;  %v900_v8 = vor.u32 %v1068_v61, %v897_v62  ;;  %v883_v10 = vld [vmem:[#allocation5 + $0x30] sm:$0xf]  ;;  %v1065_v12 = vld [vmem:[#allocation5 + $0x34] sm:$0xf] }
  0x24   :  { %373 = vmatpush.bf16.msrb.mxu0 %v940_v37  ;;  %v904_v9 = vor.u32 %v1070_v7, %v903_v6  ;;  %v1066_v11 = vld [vmem:[#allocation5 + $0x38] sm:$0xf0]  ;;  %v885_v14 = vld [vmem:[#allocation5 + $0x3c] sm:$0xf0]  ;;  %v891_v15 = vld [vmem:[#allocation5 + $0x38] sm:$0xf] }
  0x25   :  { %488 = vmatpush.bf16.msrb.mxu1 %v1004_v53  ;;  %v884_v13 = vor.u32 %v1066_v11, %v883_v10  ;;  %v1067_v16 = vld [vmem:[#allocation5 + $0x40] sm:$0xf0]  ;;  %v888_v17 = vor.u32 %v1065_v12, %v885_v14  ;;  %v987_v19 = vld [vmem:[#allocation7 + $0x40] sm:$0xf]  ;;  %v1092_v20 = vld [vmem:[#allocation7 + $0x44] sm:$0xf0] }
  0x26   :  { %337 = vmatpush.bf16.msra.mxu2 %v908_v54  ;;  %356 = vmatpush.bf16.msra.mxu3 %v912_v58  ;;  %v892_v18 = vor.u32 %v1067_v16, %v891_v15  ;;  %v988_v21 = vor.u32 %v1092_v20, %v987_v19  ;;  %v871_v22 = vld [vmem:[#allocation5 + $0x18] sm:$0xf]  ;;  %v1063_v23 = vld [vmem:[#allocation5 + $0x20] sm:$0xf0]  ;;  %v1062_v25 = vld [vmem:[#allocation5 + $0x1c] sm:$0xf] }
  0x27   :  { %v872_v26 = vor.u32 %v1063_v23, %v871_v22  ;;  %v873_v27 = vld [vmem:[#allocation5 + $0x24] sm:$0xf0]  ;;  %v879_v28 = vld [vmem:[#allocation5 + $0x20] sm:$0xf]  ;;  %v1064_v29 = vld [vmem:[#allocation5 + $0x28] sm:$0xf0] }
  0x28   :  { %374 = vmatpush.bf16.msrb.mxu0 %v928_v51  ;;  %v876_v31 = vor.u32 %v1062_v25, %v873_v27  ;;  %v880_v32 = vor.u32 %v1064_v29, %v879_v28  ;;  %v979_v33 = vld [vmem:[#allocation7 + $0x30] sm:$0xf]  ;;  %v1090_v34 = vld [vmem:[#allocation7 + $0x34] sm:$0xf0]  ;;  %v859_v36 = vld [vmem:[#allocation5] sm:$0xf] }
  0x29   :  { %489 = vmatpush.bf16.msrb.mxu1 %v996_v2  ;;  %v980_v35 = vor.u32 %v1090_v34, %v979_v33  ;;  %v1060_v37 = vld [vmem:[#allocation5 + $0x8] sm:$0xf0]  ;;  %v1059_v38 = vld [vmem:[#allocation5 + $0x4] sm:$0xf]  ;;  %v861_v40 = vld [vmem:[#allocation5 + $0xc] sm:$0xf0] }
  0x2a   :  { %338 = vmatpush.bf16.msra.mxu2 %v896_v3  ;;  %357 = vmatpush.bf16.msra.mxu3 %v900_v8  ;;  %v860_v39 = vor.u32 %v1060_v37, %v859_v36  ;;  %v867_v41 = vld [vmem:[#allocation5 + $0x8] sm:$0xf]  ;;  %v1061_v42 = vld [vmem:[#allocation5 + $0x10] sm:$0xf0]  ;;  %v864_v43 = vor.u32 %v1059_v38, %v861_v40  ;;  %v971_v45 = vld [vmem:[#allocation7 + $0x20] sm:$0xf] }
  0x2b   :  { %v868_v44 = vor.u32 %v1061_v42, %v867_v41  ;;  %v1088_v46 = vld [vmem:[#allocation7 + $0x24] sm:$0xf0]  ;;  %v1097_v48 = vld [vmem:[#allocation7 + $0x74] sm:$0xf]  ;;  %v1013_v49 = vld [vmem:[#allocation7 + $0x78] sm:$0xf0] }
  0x2c   :  { %375 = vmatpush.bf16.msrb.mxu0 %v916_v63  ;;  %v972_v47 = vor.u32 %v1088_v46, %v971_v45  ;;  %v963_v50 = vld [vmem:[#allocation7 + $0x10] sm:$0xf]  ;;  %v1016_v51 = vor.u32 %v1097_v48, %v1013_v49  ;;  %v1086_v52 = vld [vmem:[#allocation7 + $0x14] sm:$0xf0]  ;;  %v1095_v54 = vld [vmem:[#allocation7 + $0x64] sm:$0xf] }
  0x2d   :  { %490 = vmatpush.bf16.msrb.mxu1 %v988_v21  ;;  %v964_v53 = vor.u32 %v1086_v52, %v963_v50  ;;  %v1005_v55 = vld [vmem:[#allocation7 + $0x68] sm:$0xf0]  ;;  %v955_v56 = vld [vmem:[#allocation7] sm:$0xf]  ;;  %v1084_v58 = vld [vmem:[#allocation7 + $0x4] sm:$0xf0] }
  0x2e   :  { %339 = vmatpush.bf16.msra.mxu2 %v884_v13  ;;  %358 = vmatpush.bf16.msra.mxu3 %v888_v17  ;;  %v1008_v57 = vor.u32 %v1095_v54, %v1005_v55  ;;  %v956_v59 = vor.u32 %v1084_v58, %v955_v56  ;;  %v1093_v60 = vld [vmem:[#allocation7 + $0x54] sm:$0xf]  ;;  %v997_v61 = vld [vmem:[#allocation7 + $0x58] sm:$0xf0]  ;;  %v1091_v63 = vld [vmem:[#allocation7 + $0x44] sm:$0xf] }
  0x2f   :  { %v1000_v62 = vor.u32 %v1093_v60, %v997_v61  ;;  %v989_v2 = vld [vmem:[#allocation7 + $0x48] sm:$0xf0]  ;;  %v1089_v6 = vld [vmem:[#allocation7 + $0x34] sm:$0xf]  ;;  %v981_v7 = vld [vmem:[#allocation7 + $0x38] sm:$0xf0] }
  0x30   :  { %376 = vmatpush.bf16.msrb.mxu0 %v904_v9  ;;  %v992_v3 = vor.u32 %v1091_v63, %v989_v2  ;;  %v984_v8 = vor.u32 %v1089_v6, %v981_v7  ;;  %v1087_v9 = vld [vmem:[#allocation7 + $0x24] sm:$0xf]  ;;  %v973_v10 = vld [vmem:[#allocation7 + $0x28] sm:$0xf0]  ;;  %v1085_v12 = vld [vmem:[#allocation7 + $0x14] sm:$0xf] }
  0x31   :  { %491 = vmatpush.bf16.msrb.mxu1 %v980_v35  ;;  %v976_v11 = vor.u32 %v1087_v9, %v973_v10  ;;  %v965_v13 = vld [vmem:[#allocation7 + $0x18] sm:$0xf0]  ;;  %v1083_v16 = vld [vmem:[#allocation7 + $0x4] sm:$0xf]  ;;  %v957_v17 = vld [vmem:[#allocation7 + $0x8] sm:$0xf0] }
  0x32   :  { %340 = vmatpush.bf16.msra.mxu2 %v872_v26  ;;  %359 = vmatpush.bf16.msra.mxu3 %v876_v31  ;;  %v968_v15 = vor.u32 %v1085_v12, %v965_v13  ;;  %v1106_v29 = vld [vmem:[#allocation8 + $0x38] sm:$0xff]  ;;  %v1103_v35 = vld [vmem:[#allocation8 + $0x20] sm:$0xff]  ;;  %v1429_v37 = vld [vmem:[%s1548_s6] sm:$0x7] }
  0x33   :  { %v201_v38 = vperm.slane %v1429_v37, 1  ;;  %v1099_v50 = vld [vmem:[#allocation8] sm:$0xff]  ;;  %v161_v13 = vld [vmem:[%s1544_s2 + $0x8] sm:$0xff] }
  0x34   :  { %377 = vmatpush.bf16.msrb.mxu0 %v892_v18  ;;  %v960_v18 = vor.u32 %v1083_v16, %v957_v17  ;;  %v162_v6 = vld [vmem:[%s1544_s2 + $0x10] sm:$0xff] }
  0x35   :  { %492 = vmatpush.bf16.msrb.mxu1 %v972_v47  ;;  %v1100_v47 = vld [vmem:[#allocation8 + $0x8] sm:$0xff] }
  0x36   :  { %341 = vmatpush.bf16.msra.mxu2 %v860_v39  ;;  %360 = vmatpush.bf16.msra.mxu3 %v864_v43  ;;  %v1102_v39 = vld [vmem:[#allocation8 + $0x18] sm:$0xff]  ;;  %v1101_v43 = vld [vmem:[#allocation8 + $0x10] sm:$0xff] }
  0x38   :  { %378 = vmatpush.bf16.msrb.mxu0 %v880_v32  ;;  %v1105_v32 = vld [vmem:[#allocation8 + $0x30] sm:$0xff] }
  0x39   :  { %493 = vmatpush.bf16.msrb.mxu1 %v964_v53 }
  0x3a   :  { %1107 = vmatpush.bf16.msrb.mxu2 %v1016_v51  ;;  %1115 = vmatpush.bf16.msrb.mxu3 %v1106_v29 }
  0x3c   :  { %379 = vmatpush.bf16.msrb.mxu0 %v868_v44 }
  0x3d   :  { %494 = vmatpush.bf16.msrb.mxu1 %v956_v59 }
  0x3e   :  { %1108 = vmatpush.bf16.msrb.mxu2 %v1008_v57  ;;  %1116 = vmatpush.bf16.msrb.mxu3 %v1105_v32 }
  0x40   :  { %506 = vmatpush.bf16.msra.mxu0 %v1016_v51  ;;  %495 = vmatmul.bf16.vlgmr.msrb.gmra.mxu1 %v1400_v24 }
  0x41   :  { %755 = vmatpush.bf16.msra.mxu1 %v1106_v29 }
  0x42   :  { %1109 = vmatpush.bf16.msrb.mxu2 %v1000_v62 }
  0x44   :  { %507 = vmatpush.bf16.msra.mxu0 %v1008_v57 }
  0x45   :  { %756 = vmatpush.bf16.msra.mxu1 %v1105_v32 }
  0x46   :  { %1110 = vmatpush.bf16.msrb.mxu2 %v992_v3 }
  0x48   :  { %508 = vmatpush.bf16.msra.mxu0 %v1000_v62 }
  0x4a   :  { %1111 = vmatpush.bf16.msrb.mxu2 %v984_v8 }
  0x4c   :  { %509 = vmatpush.bf16.msra.mxu0 %v992_v3  ;;  %v160_v3 = vld [vmem:[%s1544_s2] sm:$0xff] }
  0x4e   :  { %1112 = vmatpush.bf16.msrb.mxu2 %v976_v11 }
  0x50   :  { %510 = vmatpush.bf16.msra.mxu0 %v984_v8  ;;  %500 = vmatmul.bf16.gmra.mxu1 %v1402_v30  ;;  %v1315_v8 = vmov 0  }
  0x51   :  { %1135 = vset.pattern.permute.xlu0 %v1315_v8  ;;  %1136 = vset.pattern.permute.xlu1 %v1315_v8 }
  0x52   :  { %1113 = vmatpush.bf16.msrb.mxu2 %v968_v15  ;;  %780 = vperm.xlu0 %1135, %v160_v3  }
  0x53   :  { %790 = vperm.xlu1 %1136, %v162_v6  }
  0x54   :  { %511 = vmatpush.bf16.msra.mxu0 %v976_v11 }
  0x56   :  { %1114 = vmatpush.bf16.msrb.mxu2 %v960_v18 }
  0x58   :  { %512 = vmatpush.bf16.msra.mxu0 %v968_v15 }
  0x5a   :  { %785 = vperm.xlu0 %1135, %v161_v13  }
  0x5c   :  { %513 = vmatpush.bf16.msra.mxu0 %v960_v18 }
  0x9c   :  { %v127_v14 = vpop.f32.mrf.mxu0 }
  0x9d   :  { %v155_v21 = vpop.f32.mrf.mxu1 }
  0xa4   :  { %v129_v19 = vpop.f32.mrf.mxu0 }
  0xa5   :  { %v164_v20 = vpack.c.bf16 %v129_v19, %v127_v14  ;;  %v157_v22 = vpop.f32.mrf.mxu1  ;;  %v163_v14 = vld [vmem:[%s1544_s2 + $0x18] sm:$0xff]  ;;  %s1316_s2 = smov [#allocation10]  }
  0xa6   :  { %v165_v23 = vpack.c.bf16 %v157_v22, %v155_v21  ;;  %795 = vperm.xlu1 %1136, %v163_v14   ;;  %v200_v14 = vperm.slane %v1429_v37, 0  ;;  %s830_s15 = sshll.u32 %s1316_s2, 4  ;;  %s831_s15 = int_to_ptr.vmem [resolvable:$true] %s830_s15 }
  0xa7   :  { %342 = vmatmul.bf16.vlgmr.msra.gmra.mxu2 %v164_v20  ;;  %361 = vmatmul.bf16.vlgmr.msra.gmra.mxu3 %v164_v20 }
  0xa8   :  { %380 = vmatmul.bf16.vlgmr.msrb.gmra.mxu0 %v164_v20 }
  0xb7   :  { %347 = vmatmul.bf16.gmra.mxu2 %v165_v23  ;;  %366 = vmatmul.bf16.gmra.mxu3 %v165_v23 }
  0xb8   :  { %385 = vmatmul.bf16.gmra.mxu0 %v165_v23 }
  0xbd   :  { %v496_v13 = vpop.f32.mrf.mxu1 }
  0xc7   :  { %519 = vmatmul.bf16.vlgmr.msrb.gmra.mxu2 %v1402_v30  ;;  %v1104_v30 = vld [vmem:[#allocation8 + $0x28] sm:$0xff] }
  0xc8   :  { %514 = vmatmul.bf16.vlgmr.msra.gmra.mxu0 %v1400_v24  ;;  %757 = vmatpush.bf16.msra.mxu1 %v1104_v30 }
  0xc9   :  { %1117 = vmatpush.bf16.msrb.mxu3 %v1104_v30 }
  0xcc   :  { %758 = vmatpush.bf16.msra.mxu1 %v1103_v35 }
  0xcd   :  { %1118 = vmatpush.bf16.msrb.mxu3 %v1103_v35 }
  0xd0   :  { %759 = vmatpush.bf16.msra.mxu1 %v1102_v39 }
  0xd1   :  { %1119 = vmatpush.bf16.msrb.mxu3 %v1102_v39 }
  0xd4   :  { %760 = vmatpush.bf16.msra.mxu1 %v1101_v43 }
  0xd5   :  { %1120 = vmatpush.bf16.msrb.mxu3 %v1101_v43 }
  0xd8   :  { %761 = vmatpush.bf16.msra.mxu1 %v1100_v47 }
  0xd9   :  { %1121 = vmatpush.bf16.msrb.mxu3 %v1100_v47 }
  0xdc   :  { %762 = vmatpush.bf16.msra.mxu1 %v1099_v50 }
  0xdd   :  { %1122 = vmatpush.bf16.msrb.mxu3 %v1099_v50 }
 0x125   :  { %v1412_v25 = vpop.f32.mrf.mxu0 }
 0x12a   :  { %v1414_v26 = vpop.f32.mrf.mxu2  ;;  %v362_v28 = vpop.f32.mrf.mxu3 }
 0x12b   :  { %v363_v41 = vadd.f32 %v362_v28, %v201_v38 }
 0x12d   :  { %v1416_v27 = vpop.f32.mrf.mxu0 }
 0x132   :  { %v1418_v31 = vpop.f32.mrf.mxu2  ;;  %v364_v34 = vpop.f32.mrf.mxu3 }
 0x133   :  { %v365_v52 = vadd.f32 %v364_v34, %v201_v38 }
 0x135   :  { %v1420_v33 = vpop.f32.mrf.mxu0 }
 0x13a   :  { %v1422_v24 = vpop.f32.mrf.mxu2  ;;  %v367_v42 = vpop.f32.mrf.mxu3 }
 0x13b   :  { %v368_v48 = vadd.f32 %v367_v42, %v201_v38 }
 0x13d   :  { %v1424_v36 = vpop.f32.mrf.mxu0 }
 0x142   :  { %v1432_v40 = vpop.f32.mrf.mxu2  ;;  %v369_v55 = vpop.f32.mrf.mxu3 }
 0x143   :  { %v370_v59 = vadd.f32 %v369_v55, %v201_v38 }
 0x145   :  { %v515_v44 = vpop.f32.mrf.mxu0 }
 0x146   :  { %v605_v45 = vadd.f32 %v515_v44, %v363_v41 }
 0x148   :  { %v1021_v46 = vmul.f32 -1.442695, %v605_v45 }
 0x14a   :  { %v520_v49 = vpop.f32.mrf.mxu2  ;;  %1137 = vpow2.f32 %v1021_v46 }
 0x14b   :  { %v607_v51 = vadd.f32 %v520_v49, %v368_v48 }
 0x14d   :  { %v1023_v53 = vmul.f32 -1.442695, %v607_v51  ;;  %v517_v54 = vpop.f32.mrf.mxu0 }
 0x14e   :  { %v606_v56 = vadd.f32 %v517_v54, %v365_v52 }
 0x14f   :  { %1139 = vpow2.f32 %v1023_v53 }
 0x150   :  { %v1022_v57 = vmul.f32 -1.442695, %v606_v56  ;;  %v1138_v58 = vpop.eup %1137 }
 0x151   :  { %v621_v60 = vadd.f32 1.0, %v1138_v58 }
 0x152   :  { %v522_v61 = vpop.f32.mrf.mxu2  ;;  %1141 = vpow2.f32 %v1022_v57 }
 0x153   :  { %v608_v62 = vadd.f32 %v522_v61, %v370_v59  ;;  %1143 = vrcp.f32 %v621_v60  ;;  %v634_v28 = vand.u32 2147483647, %v621_v60  ;;  %vm630_vm2 = vweird.f32 %v621_v60 }
 0x154   :  { %v636_v30 = vand.u32 2147483648, %v621_v60 }
 0x155   :  { %v1140_v63 = vpop.eup %1139  ;;  %v1024_v2 = vmul.f32 -1.442695, %v608_v62  ;;  %vm1456_vm4 = vcmp.eq.f32.partialorder %v634_v28, 8.507059e+37 }
 0x156   :  { %v1440_v7 = vadd.f32 1.0, %v1140_v63  ;;  %v637_v47 = vor.u32 1.1754944e-38, %v636_v30  ;;  %v351_v30 = vadd.f32 %v1432_v40, %v200_v14 }
 0x157   :  { %1145 = vpow2.f32 %v1024_v2 }
 0x158   :  { %1147 = vrcp.f32 %v1440_v7  ;;  %v1142_v9 = vpop.eup %1141  ;;  %vm660_vm7 = vweird.f32 %v1440_v7  ;;  %v664_v48 = vand.u32 2147483647, %v1440_v7  ;;  %v666_v49 = vand.u32 2147483648, %v1440_v7 }
 0x159   :  { %v1144_v10 = vpop.eup %1143  ;;  %v622_v11 = vadd.f32 1.0, %v1142_v9 }
 0x15a   :  { %v626_v12 = vmul.f32 %v1144_v10, %v621_v60  ;;  %vm631_vm1 = vweird.f32 %v1144_v10  ;;  %vm665_vm13 = vcmp.eq.f32.partialorder %v664_v48, 8.507059e+37  ;;  %v667_v61 = vor.u32 1.1754944e-38, %v666_v49 }
 0x15b   :  { %1149 = vrcp.f32 %v622_v11  ;;  %vm1450_vm3 = vmor %vm630_vm2, %vm631_vm1  ;;  %v649_v38 = vand.u32 2147483647, %v622_v11  ;;  %v651_v43 = vand.u32 2147483648, %v622_v11  ;;  %vm645_vm8 = vweird.f32 %v622_v11 }
 0x15c   :  { %v627_v16 = vsub.f32 1.0, %v626_v12 }
 0x15d   :  { %v1146_v15 = vpop.eup %1145  ;;  %vm650_vm9 = vcmp.eq.f32.partialorder %v649_v38, 8.507059e+37  ;;  %v652_v54 = vor.u32 1.1754944e-38, %v651_v43 }
 0x15e   :  { %v1148_v17 = vpop.eup %1147  ;;  %v624_v18 = vadd.f32 1.0, %v1146_v15  ;;  %v628_v19 = vmul.f32 %v1144_v10, %v627_v16  ;;  %v498_v15 = vpop.f32.mrf.mxu1  ;;  %v344_v16 = vadd.f32 %v1414_v26, %v200_v14 }
 0x15f   :  { %v656_v20 = vmul.f32 %v1148_v17, %v1440_v7  ;;  %vm661_vm5 = vweird.f32 %v1148_v17 }
 0x160   :  { %1151 = vrcp.f32 %v624_v18  ;;  %v629_v23 = vadd.f32 %v1144_v10, %v628_v19  ;;  %vm1463_vm10 = vmor %vm660_vm7, %vm661_vm5  ;;  %v679_v55 = vand.u32 2147483647, %v624_v18  ;;  %v681_v56 = vand.u32 2147483648, %v624_v18 }
 0x161   :  { %v657_v21 = vsub.f32 1.0, %v656_v20  ;;  %v1150_v22 = vpop.eup %1149  ;;  %vm675_vm14 = vweird.f32 %v624_v18  ;;  %v346_v19 = vadd.f32 %v1418_v31, %v200_v14 }
 0x162   :  { %v641_v29 = vmul.f32 %v1150_v22, %v622_v11  ;;  %v633_v41 = vsel %vm1450_vm3, %v1144_v10, %v629_v23  ;;  %vm646_vm6 = vweird.f32 %v1150_v22  ;;  %v682_v6 = vor.u32 1.1754944e-38, %v681_v56 }
 0x163   :  { %v658_v32 = vmul.f32 %v1148_v17, %v657_v21  ;;  %v638_v53 = vsel %vm1456_vm4, %v637_v47, %v633_v41  ;;  %vm647_vm11 = vmor %vm645_vm8, %vm646_vm6  ;;  %vm680_vm0 = vcmp.eq.f32.partialorder %v679_v55, 8.507059e+37  ;;  %v349_v21 = vadd.f32 %v1422_v24, %v200_v14 }
 0x164   :  { %v642_v34 = vsub.f32 1.0, %v641_v29  ;;  %v685_v62 = vmul.f32 %v638_v53, %v1375_v0  ;;  %v781_v53 = vpop.permute.xlu0 %780 }
 0x165   :  { %v659_v46 = vadd.f32 %v1148_v17, %v658_v32 }
 0x166   :  { %v1152_v39 = vpop.eup %1151  ;;  %v643_v44 = vmul.f32 %v1150_v22, %v642_v34  ;;  %v501_v20 = vpop.f32.mrf.mxu1 }
 0x167   :  { %v671_v45 = vmul.f32 %v1152_v39, %v624_v18  ;;  %v663_v58 = vsel %vm1463_vm10, %v1148_v17, %v659_v46  ;;  %vm676_vm12 = vweird.f32 %v1152_v39  ;;  %v525_v17 = vadd.f32 %v496_v13, %v344_v16 }
 0x168   :  { %v644_v51 = vadd.f32 %v1150_v22, %v643_v44  ;;  %v668_v3 = vsel %vm665_vm13, %v667_v61, %v663_v58  ;;  %vm677_vm15 = vmor %vm675_vm14, %vm676_vm12  ;;  %v527_v23 = vadd.f32 %v501_v20, %v349_v21 }
 0x169   :  { %v672_v50 = vsub.f32 1.0, %v671_v45  ;;  %v687_v10 = vmul.f32 %v668_v3, %v1389_v4  ;;  %v1017_v18 = vmul.f32 -1.442695, %v525_v17 }
 0x16a   :  { %v648_v57 = vsel %vm647_vm11, %v1150_v22, %v644_v51  ;;  %v526_v22 = vadd.f32 %v498_v15, %v346_v19  ;;  %v1019_v32 = vmul.f32 -1.442695, %v527_v23 }
 0x16b   :  { %v673_v59 = vmul.f32 %v1152_v39, %v672_v50  ;;  %v653_v60 = vsel %vm650_vm9, %v652_v54, %v648_v57  ;;  %1153 = vpow2.f32 %v1017_v18  ;;  %v1491_v50 = vperm.slane %v1429_v37, 2 }
 0x16c   :  { %v686_v63 = vmul.f32 %v653_v60, %v1380_v1  ;;  %v1018_v28 = vmul.f32 -1.442695, %v526_v22  ;;  %v786_v14 = vpop.permute.xlu0 %785 }
 0x16d   :  { %v674_v2 = vadd.f32 %v1152_v39, %v673_v59  ;;  %v382_v55 = vadd.f32 %v1412_v25, %v1491_v50  ;;  %v387_v16 = vadd.f32 %v1420_v33, %v1491_v50 }
 0x16e   :  { %v689_v7 = vpack.c.bf16 %v686_v63, %v685_v62  ;;  %v503_v34 = vpop.f32.mrf.mxu1  ;;  %1155 = vpow2.f32 %v1018_v28 }
 0x16f   :  { %v678_v8 = vsel %vm677_vm15, %v1152_v39, %v674_v2  ;;  %1157 = vpow2.f32 %v1019_v32  ;;  %v528_v26 = vadd.f32 %v503_v34, %v351_v30 }
 0x170   :  { %v683_v9 = vsel %vm680_vm0, %v682_v6, %v678_v8  ;;  %763 = vmatmul.bf16.vlgmr.msra.gmra.mxu1 %v689_v7  ;;  %v384_v8 = vadd.f32 %v1416_v27, %v1491_v50  ;;  %v791_v27 = vpop.permute.xlu1 %790 }
 0x171   :  { %v688_v11 = vmul.f32 %v683_v9, %v1394_v5  ;;  %v1154_v29 = vpop.eup %1153  ;;  %v1020_v39 = vmul.f32 -1.442695, %v528_v26 }
 0x172   :  { %v541_v35 = vadd.f32 1.0, %v1154_v29 }
 0x173   :  { %v690_v12 = vpack.c.bf16 %v688_v11, %v687_v10 }
 0x174   :  { %1159 = vrcp.f32 %v541_v35  ;;  %v1156_v38 = vpop.eup %1155  ;;  %v556_v56 = vand.u32 2147483648, %v541_v35  ;;  %vm550_vm2 = vweird.f32 %v541_v35  ;;  %v554_v59 = vand.u32 2147483647, %v541_v35 }
 0x175   :  { %768 = vmatmul.bf16.vlgmr.msrb.gmra.mxu3 %v690_v12  ;;  %v1158_v31 = vpop.eup %1157  ;;  %v542_v41 = vadd.f32 1.0, %v1156_v38  ;;  %1161 = vpow2.f32 %v1020_v39 }
 0x176   :  { %v1480_v42 = vadd.f32 1.0, %v1158_v31  ;;  %v557_v63 = vor.u32 1.1754944e-38, %v556_v56  ;;  %vm555_vm4 = vcmp.eq.f32.partialorder %v554_v59, 8.507059e+37 }
 0x177   :  { %1163 = vrcp.f32 %v542_v41  ;;  %vm565_vm6 = vweird.f32 %v542_v41  ;;  %v569_v9 = vand.u32 2147483647, %v542_v41  ;;  %v571_v10 = vand.u32 2147483648, %v542_v41 }
 0x178   :  { %1165 = vrcp.f32 %v1480_v42  ;;  %v586_v17 = vand.u32 2147483648, %v1480_v42  ;;  %vm580_vm9 = vweird.f32 %v1480_v42  ;;  %v584_v21 = vand.u32 2147483647, %v1480_v42 }
 0x179   :  { %vm570_vm10 = vcmp.eq.f32.partialorder %v569_v9, 8.507059e+37  ;;  %v572_v33 = vor.u32 1.1754944e-38, %v571_v10 }
 0x17a   :  { %v1160_v24 = vpop.eup %1159  ;;  %v587_v38 = vor.u32 1.1754944e-38, %v586_v17  ;;  %vm585_vm12 = vcmp.eq.f32.partialorder %v584_v21, 8.507059e+37 }
 0x17b   :  { %v546_v43 = vmul.f32 %v1160_v24, %v541_v35  ;;  %v1162_v44 = vpop.eup %1161  ;;  %vm551_vm1 = vweird.f32 %v1160_v24 }
 0x17c   :  { %v1485_v46 = vadd.f32 1.0, %v1162_v44  ;;  %vm552_vm3 = vmor %vm550_vm2, %vm551_vm1 }
 0x17d   :  { %v547_v40 = vsub.f32 1.0, %v546_v43  ;;  %v1483_v45 = vpop.eup %1163  ;;  %v389_v43 = vadd.f32 %v1424_v36, %v1491_v50 }
 0x17e   :  { %v1487_v47 = vpop.eup %1165  ;;  %v561_v48 = vmul.f32 %v1483_v45, %v542_v41  ;;  %1167 = vrcp.f32 %v1485_v46  ;;  %vm566_vm5 = vweird.f32 %v1483_v45  ;;  %vm595_vm14 = vweird.f32 %v1485_v46 }
 0x17f   :  { %v548_v49 = vmul.f32 %v1160_v24, %v547_v40  ;;  %v576_v51 = vmul.f32 %v1487_v47, %v1480_v42  ;;  %vm581_vm7 = vweird.f32 %v1487_v47  ;;  %vm1513_vm8 = vmor %vm565_vm6, %vm566_vm5  ;;  %v599_v40 = vand.u32 2147483647, %v1485_v46 }
 0x180   :  { %v562_v52 = vsub.f32 1.0, %v561_v48  ;;  %vm582_vm11 = vmor %vm580_vm9, %vm581_vm7 }
 0x181   :  { %v549_v54 = vadd.f32 %v1160_v24, %v548_v49  ;;  %v577_v57 = vsub.f32 1.0, %v576_v51  ;;  %vm600_vm0 = vcmp.eq.f32.partialorder %v599_v40, 8.507059e+37 }
 0x182   :  { %v563_v62 = vmul.f32 %v1483_v45, %v562_v52  ;;  %v796_v52 = vpop.permute.xlu1 %795 }
 0x183   :  { %v553_v61 = vsel %vm552_vm3, %v1160_v24, %v549_v54  ;;  %v578_v3 = vmul.f32 %v1487_v47, %v577_v57 }
 0x184   :  { %v1498_v60 = vpop.eup %1167  ;;  %v558_v25 = vsel %vm555_vm4, %v557_v63, %v553_v61  ;;  %v564_v7 = vadd.f32 %v1483_v45, %v563_v62 }
 0x185   :  { %v591_v6 = vmul.f32 %v1498_v60, %v1485_v46  ;;  %v810_v12 = vsub.f32 1.0, %v558_v25  ;;  %v579_v15 = vadd.f32 %v1487_v47, %v578_v3  ;;  %vm596_vm13 = vweird.f32 %v1498_v60 }
 0x186   :  { %v568_v20 = vsel %vm1513_vm8, %v1483_v45, %v564_v7  ;;  %vm597_vm15 = vmor %vm595_vm14, %vm596_vm13 }
 0x187   :  { %v592_v11 = vsub.f32 1.0, %v591_v6  ;;  %v814_v34 = vmul.f32 %v810_v12, %v1375_v0  ;;  %v583_v35 = vsel %vm582_vm11, %v1487_v47, %v579_v15  ;;  %v573_v26 = vsel %vm570_vm10, %v572_v33, %v568_v20 }
 0x188   :  { %v588_v41 = vsel %vm585_vm12, %v587_v38, %v583_v35  ;;  %v811_v24 = vsub.f32 1.0, %v573_v26  ;;  %v601_v0 = vand.u32 2147483648, %v1485_v46 }
 0x189   :  { %v593_v32 = vmul.f32 %v1498_v60, %v592_v11  ;;  %v812_v44 = vsub.f32 1.0, %v588_v41 }
 0x18a   :  { %v815_v51 = vmul.f32 %v811_v24, %v1380_v1 }
 0x18b   :  { %v594_v42 = vadd.f32 %v1498_v60, %v593_v32  ;;  %v816_v57 = vmul.f32 %v812_v44, %v1389_v4 }
 0x1ed   :  { %v764_v58 = vpop.f32.mrf.mxu1 }
 0x1ee   :  { %v774_v37 = vadd.f32 %v764_v58, %v382_v55  ;;  %v602_v55 = vor.u32 1.1754944e-38, %v601_v0 }
 0x1f0   :  { %v798_v2 = vmul.f32 %v781_v53, %v774_v37  ;;  %v598_v53 = vsel %vm597_vm15, %v1498_v60, %v594_v42 }
 0x1f1   :  { %v603_v58 = vsel %vm600_vm0, %v602_v55, %v598_v53 }
 0x1f2   :  { %1169 = vtanh.f32 %v798_v2  ;;  %v813_v59 = vsub.f32 1.0, %v603_v58 }
 0x1f4   :  { %v817_v60 = vmul.f32 %v813_v59, %v1394_v5 }
 0x1f5   :  { %v766_v13 = vpop.f32.mrf.mxu1 }
 0x1f6   :  { %v775_v18 = vadd.f32 %v766_v13, %v384_v8 }
 0x1f8   :  { %v769_v22 = vpop.f32.mrf.mxu3  ;;  %v1170_v23 = vpop.eup %1169  ;;  %v799_v28 = vmul.f32 %v786_v14, %v775_v18 }
 0x1f9   :  { %v776_v29 = vadd.f32 %v769_v22, %v387_v16  ;;  %v806_v30 = vmul.f32 %v1170_v23, %v558_v25 }
 0x1fa   :  { %1171 = vtanh.f32 %v799_v28 }
 0x1fb   :  { %v800_v39 = vmul.f32 %v791_v27, %v776_v29  ;;  %v818_v31 = vadd.f32 %v814_v34, %v806_v30 }
 0x1fd   :  { %1173 = vtanh.f32 %v800_v39  ;;  %822 = vst [vmem:[#allocation10] sm:$0xff] %v818_v31 }
 0x200   :  { %v771_v45 = vpop.f32.mrf.mxu3  ;;  %v1172_v47 = vpop.eup %1171 }
 0x201   :  { %v777_v48 = vadd.f32 %v771_v45, %v389_v43  ;;  %v807_v49 = vmul.f32 %v1172_v47, %v573_v26 }
 0x203   :  { %v1174_v54 = vpop.eup %1173  ;;  %v801_v36 = vmul.f32 %v796_v52, %v777_v48  ;;  %v819_v50 = vadd.f32 %v815_v51, %v807_v49 }
 0x204   :  { %v808_v56 = vmul.f32 %v1174_v54, %v588_v41 }
 0x205   :  { %1175 = vtanh.f32 %v801_v36  ;;  %823 = vst [vmem:[#allocation10 + $0x8] sm:$0xff] %v819_v50 }
 0x206   :  { %v820_v46 = vadd.f32 %v816_v57, %v808_v56 }
 0x208   :  { %824 = vst [vmem:[#allocation10 + $0x10] sm:$0xff] %v820_v46 }
 0x20b   :  { %v1176_v37 = vpop.eup %1175 }
 0x20c   :  { %v809_v1 = vmul.f32 %v1176_v37, %v603_v58 }
 0x20e   :  { %v821_v61 = vadd.f32 %v817_v60, %v809_v1 }
 0x210   :  { %825 = vst [vmem:[#allocation10 + $0x18] sm:$0xff] %v821_v61 }
 0x211   :  { %838 = dma.vmem_to_hbm [thread:$0]  %s831_s15, 512, %s833_s18, [#allocation4], %s1312_s21, %s1312_s21, %s1313_s22  }
 0x212   :  { %1303 = dma.done.wait [#allocation4], 512  }
 0x213   :  { %1304 = vsyncadd [#allocation4], 4294966784 }
 0x214   :  { %843 = vsyncpa [#allocation3], 1 }
 0x215   :  { %844 = vsyncpa [#allocation6], 1 }
 0x216   :  { %845 = vsyncpa [#allocation9], 1 }
 0x217   :  { %846 = vsyncpa [#allocation4], 1 }

</bundles_post_ra>
